<compile_context>
chip_gen: v5e
topology: v5e:2x2
jax: 0.10.0
libtpu: 0.0.40
codegen_flags: <defaults>
</compile_context>

<pallas_src>
import functools

import jax
import jax.numpy as jnp
from jax.experimental import pallas as pl
from jax.experimental.pallas import tpu as pltpu


# --------------------------------------------------------------------------- #
# Small integer helpers
# --------------------------------------------------------------------------- #
def _round_up(x: int, m: int) -> int:
    return ((x + m - 1) // m) * m


def _largest_aligned_divisor(dim: int, align: int, cap: int) -> int:
    """Largest d with d % align == 0, dim % d == 0 and d <= cap (min: align)."""
    assert dim % align == 0, (dim, align)
    q = dim // align
    best = 1
    i = 1
    while i * i <= q:
        if q % i == 0:
            for f in (i, q // i):
                if align * f <= cap and f > best:
                    best = f
        i += 1
    return align * best


def _pick_tile(dim: int, align: int, target: int):
    """Pad `dim` to `align`; pick a tile that divides the padded dim.

    Prefers the largest aligned divisor <= target (zero extra padding). Only if
    that divisor is degenerately small (prime-ish dims -> many grid steps) do we
    fall back to tile=target and pad the dim up to a multiple of it.
    Returns (tile, padded_dim).
    """
    dp = _round_up(dim, align)
    if dp <= target:
        return dp, dp
    tile = _largest_aligned_divisor(dp, align, target)
    if tile * 4 < target:          # degenerate divisor -> accept minimal re-pad
        tile = target
        dp = _round_up(dp, tile)
    return tile, dp


# --------------------------------------------------------------------------- #
# Generation-aware hardware targets
# --------------------------------------------------------------------------- #
@functools.lru_cache(maxsize=1)
def _tpu_hw():
    """Best-effort (vmem_bytes, num_tensorcores) with safe fallbacks."""
    vmem = 128 << 20
    n_cores = 1
    try:
        info = pltpu.get_tpu_info()
        vmem = int(getattr(info, "vmem_capacity_bytes", vmem))
    except Exception:
        pass
    try:
        kind = jax.devices()[0].device_kind.lower()
        if "v7" in kind:           # 2 TensorCores per chip
            n_cores = 2
    except Exception:
        pass
    return vmem, n_cores


def _hw_targets():
    vmem, n_cores = _tpu_hw()
    if vmem <= (96 << 20):
        # v7x-class part: 64 MiB VMEM per TC -> capped tile plan.
        return {"tm": 512, "tn": 512, "tk": 1024, "n_cores": n_cores, "vmem": vmem}
    # v5e / v6e: 128 MiB VMEM -> bigger tiles, fewer grid steps.
    return {"tm": 512, "tn": 1024, "tk": 2048, "n_cores": n_cores, "vmem": vmem}


# --------------------------------------------------------------------------- #
# Kernels
# --------------------------------------------------------------------------- #
def _linear_kernel_f32(x_ref, w_ref, b_ref, o_ref):
    """float32 output: accumulate directly into o_ref (no scratch)."""
    k = pl.program_id(2)

    @pl.when(k == 0)
    def _():
        o_ref[...] = jnp.zeros_like(o_ref)

    o_ref[...] += jnp.dot(x_ref[...], w_ref[...],
                          preferred_element_type=jnp.float32)

    @pl.when(k == pl.num_programs(2) - 1)
    def _():
        o_ref[...] += b_ref[...].astype(o_ref.dtype)


def _linear_kernel_acc(x_ref, w_ref, b_ref, o_ref, acc_ref):
    """Narrow output dtypes: f32 VMEM accumulator, cast on the last K step."""
    k = pl.program_id(2)

    @pl.when(k == 0)
    def _():
        acc_ref[...] = jnp.zeros_like(acc_ref)

    acc_ref[...] += jnp.dot(x_ref[...], w_ref[...],
                            preferred_element_type=jnp.float32)

    @pl.when(k == pl.num_programs(2) - 1)
    def _():
        o_ref[...] = (acc_ref[...] + b_ref[...].astype(jnp.float32)
                      ).astype(o_ref.dtype)


# --------------------------------------------------------------------------- #
# One-time parameter preparation (hoisted out of the per-call path)
# --------------------------------------------------------------------------- #
def prepare_linear_params(weight, bias):
    """Transpose W (Out, In) -> (In, Out) and pad to lane-aligned (Kp, Np).

    Run once at parameter setup; the padded/pre-transposed arrays are what the
    hot forward path consumes (no per-call weight HBM copies).
    """
    out_features, in_features = weight.shape
    t = _hw_targets()
    _, kp = _pick_tile(in_features, 128, t["tk"])
    _, np_ = _pick_tile(out_features, 128, t["tn"])
    w_p = jnp.zeros((kp, np_), weight.dtype).at[:in_features, :out_features].set(weight.T)
    b_p = jnp.zeros((1, np_), bias.dtype).at[0, :out_features].set(bias)
    return w_p, b_p


# --------------------------------------------------------------------------- #
# Forward
# --------------------------------------------------------------------------- #
@functools.partial(jax.jit, static_argnames=("out_features",))
def linear_forward(x, w_prepared, b_prepared, *, out_features):
    """y = x @ W^T + b using the pre-transposed/padded params.

    x:          (B, In)
    w_prepared: (Kp, Np)  from prepare_linear_params
    b_prepared: (1, Np)
    returns     (B, out_features)
    """
    batch, in_features = x.shape
    kp, np_ = w_prepared.shape
    assert kp >= in_features and np_ >= out_features, (kp, np_, in_features, out_features)

    t = _hw_targets()
    tm, mp = _pick_tile(batch, 8, t["tm"])
    tk = _largest_aligned_divisor(kp, 128, t["tk"])
    tn = _largest_aligned_divisor(np_, 128, t["tn"])

    # v7x (2 TensorCores): make sure the "parallel" axes have >= 2 blocks.
    if t["n_cores"] >= 2 and (mp // tm) * (np_ // tn) < 2:
        if np_ >= 256:
            tn = _largest_aligned_divisor(np_, 128, np_ // 2)
        elif mp >= 16:
            tm = _largest_aligned_divisor(mp, 8, mp // 2)

    assert mp % tm == 0 and np_ % tn == 0 and kp % tk == 0

    # Fast path: no x copy when already tile-aligned.
    if (mp, kp) != (batch, in_features):
        x_in = jnp.zeros((mp, kp), x.dtype).at[:batch, :in_features].set(x)
    else:
        x_in = x

    out_dtype = x.dtype
    use_scratch = out_dtype != jnp.float32
    kernel = _linear_kernel_acc if use_scratch else _linear_kernel_f32
    scratch = [pltpu.VMEM((tm, tn), jnp.float32)] if use_scratch else []

    # Explicit VMEM budget: double-buffered blocks + scratch + headroom,
    # never above ~75% of physical VMEM (covers v5e's 16 MiB scoped default).
    elt = jnp.dtype(x.dtype).itemsize
    need = 2 * (tm * tk + tk * tn + tm * tn + tn) * elt
    if use_scratch:
        need += tm * tn * 4
    vmem_limit = int(min(int(0.75 * t["vmem"]), max(32 << 20, need + (8 << 20))))

    grid = (mp // tm, np_ // tn, kp // tk)

    out_p = pl.pallas_call(
        kernel,
        out_shape=jax.ShapeDtypeStruct((mp, np_), out_dtype),
        grid=grid,
        in_specs=[
            pl.BlockSpec((tm, tk), lambda i, j, k: (i, k)),   # x tile
            pl.BlockSpec((tk, tn), lambda i, j, k: (k, j)),   # W^T tile
            pl.BlockSpec((1, tn), lambda i, j, k: (0, j)),    # bias (resident in i, k)
        ],
        out_specs=pl.BlockSpec((tm, tn), lambda i, j, k: (i, j)),
        scratch_shapes=scratch,
        compiler_params=pltpu.CompilerParams(
            # K reduction is the LAST grid axis and must stay "arbitrary".
            dimension_semantics=("parallel", "parallel", "arbitrary"),
            vmem_limit_bytes=vmem_limit,
        ),
    )(x_in, w_prepared, b_prepared)

    return out_p[:batch, :out_features]


# --------------------------------------------------------------------------- #
# Demo / self-check
# --------------------------------------------------------------------------- #
if __name__ == "__main__":
    # Matches the reference script: x = [[1],[2],[3],[4]], Linear(1, 1).
    # NOTE: at this tiny shape the kernel is pure overhead vs. fused XLA; the
    # tiled design is what pays off at real layer sizes.
    input_size, output_size = 1, 1
    x = jnp.array([[1.0], [2.0], [3.0], [4.0]], dtype=jnp.float32)

    key = jax.random.PRNGKey(0)
    kw, kb = jax.random.split(key)
    bound = 1.0 / (input_size ** 0.5)
    weight = jax.random.uniform(
        kw, (output_size, input_size), jnp.float32, minval=-bound, maxval=bound
    )
    bias = jax.random.uniform(
        kb, (output_size,), jnp.float32, minval=-bound, maxval=bound
    )

    # One-time parameter prep (transpose + pad), then the fast forward path.
    w_prep, b_prep = prepare_linear_params(weight, bias)
    y = linear_forward(x, w_prep, b_prep, out_features=output_size)
    y = jax.block_until_ready(y)

    y_ref = x @ weight.T + bias
    assert y.shape == (4, 1), y.shape
    assert jnp.allclose(y, y_ref, atol=1e-6), (y, y_ref)

    # Non-trivial, non-aligned shape to exercise tiling / padding / slicing.
    kx, kw2, kb2 = jax.random.split(jax.random.PRNGKey(1), 3)
    B2, In2, Out2 = 100, 300, 200
    x2 = jax.random.normal(kx, (B2, In2), jnp.float32)
    w2 = jax.random.normal(kw2, (Out2, In2), jnp.float32) * 0.05
    b2 = jax.random.normal(kb2, (Out2,), jnp.float32)
    w2p, b2p = prepare_linear_params(w2, b2)
    y2 = jax.block_until_ready(linear_forward(x2, w2p, b2p, out_features=Out2))
    y2_ref = x2 @ w2.T + b2
    assert jnp.allclose(y2, y2_ref, atol=1e-3, rtol=1e-3)

    print("KERNEL_OK")
</pallas_src>

<mosaic_0001>
module attributes {stable_mosaic.version = 11 : i64} {
  func.func @_linear_kernel_f32(%arg0: i32, %arg1: i32, %arg2: i32, %arg3: memref<8x128xf32, #tpu.memory_space<vmem>>, %arg4: memref<128x128xf32, #tpu.memory_space<vmem>>, %arg5: memref<1x128xf32, #tpu.memory_space<vmem>>, %arg6: memref<8x128xf32, #tpu.memory_space<vmem>>) attributes {dimension_semantics = [#tpu.dimension_semantics<parallel>, #tpu.dimension_semantics<parallel>, #tpu.dimension_semantics<arbitrary>], iteration_bounds = array<i64: 1, 1, 1>, scalar_prefetch = 0 : i64, scratch_operands = 0 : i64, tpu.core_type = #tpu.core_type<tc>, window_params = [{transform_indices = @transform_0, window_bounds = array<i64: 8, 128>}, {transform_indices = @transform_1, window_bounds = array<i64: 128, 128>}, {transform_indices = @transform_2, window_bounds = array<i64: 1, 128>}, {transform_indices = @transform_3, window_bounds = array<i64: 8, 128>}]} {
    %c0_i32 = arith.constant 0 : i32
    %0 = arith.cmpi eq, %arg2, %c0_i32 : i32
    %1 = arith.extui %0 : i1 to i32
    %c0_i32_0 = arith.constant 0 : i32
    %2 = arith.cmpi ne, %1, %c0_i32_0 : i32
    scf.if %2 {
      %cst_10 = arith.constant 0.000000e+00 : f32
      %12 = vector.broadcast %cst_10 : f32 to vector<8x128xf32>
      %c0_11 = arith.constant 0 : index
      %c0_12 = arith.constant 0 : index
      %13 = vector.load %arg6[%c0_11, %c0_12] : memref<8x128xf32, #tpu.memory_space<vmem>>, vector<8x128xf32>
      tpu.vector_store %arg6[%c0_11, %c0_12], %12 {strides = array<i32>} : memref<8x128xf32, #tpu.memory_space<vmem>>, vector<8x128xf32>,
    } else {
    }
    %c0 = arith.constant 0 : index
    %c0_1 = arith.constant 0 : index
    %3 = vector.load %arg6[%c0, %c0_1] : memref<8x128xf32, #tpu.memory_space<vmem>>, vector<8x128xf32>
    %c0_2 = arith.constant 0 : index
    %c0_3 = arith.constant 0 : index
    %4 = vector.load %arg3[%c0_2, %c0_3] : memref<8x128xf32, #tpu.memory_space<vmem>>, vector<8x128xf32>
    %c0_4 = arith.constant 0 : index
    %c0_5 = arith.constant 0 : index
    %5 = vector.load %arg4[%c0_4, %c0_5] : memref<128x128xf32, #tpu.memory_space<vmem>>, vector<128x128xf32>
    %cst = arith.constant dense<0.000000e+00> : vector<8x128xf32>
    %6 = tpu.matmul %4, %5, %cst {dimension_numbers = #tpu.dot_dimension_numbers<[1], [0], [0], [1], [0, 0, 1, 1], [], []>} : vector<8x128xf32>, vector<128x128xf32>, vector<8x128xf32> -> vector<8x128xf32>
    %7 = arith.addf %3, %6 : vector<8x128xf32>
    %c0_6 = arith.constant 0 : index
    %c0_7 = arith.constant 0 : index
    %8 = vector.load %arg6[%c0_6, %c0_7] : memref<8x128xf32, #tpu.memory_space<vmem>>, vector<8x128xf32>
    tpu.vector_store %arg6[%c0_6, %c0_7], %7 {strides = array<i32>} : memref<8x128xf32, #tpu.memory_space<vmem>>, vector<8x128xf32>,
    %c0_i32_8 = arith.constant 0 : i32
    %9 = arith.cmpi eq, %arg2, %c0_i32_8 : i32
    %10 = arith.extui %9 : i1 to i32
    %c0_i32_9 = arith.constant 0 : i32
    %11 = arith.cmpi ne, %10, %c0_i32_9 : i32
    scf.if %11 {
      %c0_10 = arith.constant 0 : index
      %c0_11 = arith.constant 0 : index
      %12 = vector.load %arg6[%c0_10, %c0_11] : memref<8x128xf32, #tpu.memory_space<vmem>>, vector<8x128xf32>
      %c0_12 = arith.constant 0 : index
      %c0_13 = arith.constant 0 : index
      %13 = vector.load %arg5[%c0_12, %c0_13] : memref<1x128xf32, #tpu.memory_space<vmem>>, vector<1x128xf32>
      %14 = vector.broadcast %13 : vector<1x128xf32> to vector<8x128xf32>
      %15 = arith.addf %12, %14 : vector<8x128xf32>
      %c0_14 = arith.constant 0 : index
      %c0_15 = arith.constant 0 : index
      %16 = vector.load %arg6[%c0_14, %c0_15] : memref<8x128xf32, #tpu.memory_space<vmem>>, vector<8x128xf32>
      tpu.vector_store %arg6[%c0_14, %c0_15], %15 {strides = array<i32>} : memref<8x128xf32, #tpu.memory_space<vmem>>, vector<8x128xf32>,
    } else {
    }
    return
  }
  func.func @transform_0(%arg0: i32, %arg1: i32, %arg2: i32) -> (i32, i32) {
    %c0_i32 = arith.constant 0 : i32
    return %arg0, %arg2 : i32, i32
  }
  func.func @transform_1(%arg0: i32, %arg1: i32, %arg2: i32) -> (i32, i32) {
    %c0_i32 = arith.constant 0 : i32
    return %arg2, %arg1 : i32, i32
  }
  func.func @transform_2(%arg0: i32, %arg1: i32, %arg2: i32) -> (i32, i32) {
    %c0_i32 = arith.constant 0 : i32
    %c0_i32_0 = arith.constant 0 : i32
    return %c0_i32, %arg1 : i32, i32
  }
  func.func @transform_3(%arg0: i32, %arg1: i32, %arg2: i32) -> (i32, i32) {
    %c0_i32 = arith.constant 0 : i32
    return %arg0, %arg1 : i32, i32
  }
}

</mosaic_0001>

<bundles_post_ra>
// kernel: linear_forward.1
= control target key start
LH: loop header
LB: loop body
LE: loop exit
PB: predicated region body
PF: predicated region fallthrough
CT: control target
= control target key end

     0   :  { %8 = vsyncpa [#allocation3], 0  ;;  %s121_s15 = smov [#allocation2]   ;;  %s122_s17 = smov 128   ;;  %s156_s0 = inlined_call_operand.vmem [shape: f32[8,128], index: 0, kind: input, shape index: {}]   ;;  %s157_s1 = inlined_call_operand.hbm [shape: f32[128,128], index: 1, kind: input, shape index: {}]   ;;  %s158_s2 = inlined_call_operand.vmem [shape: f32[1,128], index: 2, kind: input, shape index: {}]   ;;  %s159_s3 = inlined_call_operand.vmem [shape: f32[8,128], index: 3, kind: output, shape index: {}]  }
   0x1   :  { %s15_s14 = sshll.u32 %s157_s1, 4  ;;  %s17_s16 = sshll.u32 %s121_s15, 4  ;;  %s16_s14 = int_to_ptr.hbm [resolvable:$true] %s15_s14  ;;  %s18_s16 = int_to_ptr.vmem [resolvable:$true] %s17_s16 }
   0x2   :  { %s123_s18 = smov 8  }
   0x3   :  { %23 = dma.hbm_to_vmem [thread:$0]  %s16_s14, 2048, %s18_s16, [#allocation3], %s122_s17, %s122_s17, %s123_s18  }
   0x4   :  { %119 = dma.done.wait [#allocation3], 2048  }
   0x5   :  { %120 = vsyncadd [#allocation3], 4294965248  ;;  %v52_v0 = vld [vmem:[#allocation2 + $0x78] sm:$0xff]  ;;  %v51_v1 = vld [vmem:[#allocation2 + $0x70] sm:$0xff] }
   0x6   :  { %53 = vmatpush.msra.mxu0 %v52_v0  ;;  %v50_v2 = vld [vmem:[#allocation2 + $0x68] sm:$0xff]  ;;  %v49_v3 = vld [vmem:[#allocation2 + $0x60] sm:$0xff]  ;;  %v48_v4 = vld [vmem:[#allocation2 + $0x58] sm:$0xff] }
   0x7   :  { %v47_v5 = vld [vmem:[#allocation2 + $0x50] sm:$0xff]  ;;  %v46_v6 = vld [vmem:[#allocation2 + $0x48] sm:$0xff]  ;;  %v45_v7 = vld [vmem:[#allocation2 + $0x40] sm:$0xff] }
   0x8   :  { %54 = vmatpush.msra.mxu0 %v51_v1  ;;  %v44_v8 = vld [vmem:[#allocation2 + $0x38] sm:$0xff]  ;;  %v43_v9 = vld [vmem:[#allocation2 + $0x30] sm:$0xff]  ;;  %v42_v10 = vld [vmem:[#allocation2 + $0x28] sm:$0xff] }
   0x9   :  { %v41_v11 = vld [vmem:[#allocation2 + $0x20] sm:$0xff]  ;;  %v40_v12 = vld [vmem:[#allocation2 + $0x18] sm:$0xff]  ;;  %v39_v13 = vld [vmem:[#allocation2 + $0x10] sm:$0xff] }
   0xa   :  { %55 = vmatpush.msra.mxu0 %v50_v2  ;;  %v38_v14 = vld [vmem:[#allocation2 + $0x8] sm:$0xff]  ;;  %v37_v15 = vld [vmem:[#allocation2] sm:$0xff] }
   0xb   :  { %v36_v16 = vld [vmem:[%s156_s0] sm:$0xff] }
   0xc   :  { %56 = vmatpush.msra.mxu0 %v49_v3  ;;  %v94_v17 = vld [vmem:[%s158_s2] ss:$0 sm:$0xff] }
   0xe   :  { %57 = vmatpush.msra.mxu0 %v48_v4 }
  0x10   :  { %58 = vmatpush.msra.mxu0 %v47_v5 }
  0x12   :  { %59 = vmatpush.msra.mxu0 %v46_v6 }
  0x14   :  { %60 = vmatpush.msra.mxu0 %v45_v7 }
  0x16   :  { %61 = vmatpush.msra.mxu0 %v44_v8 }
  0x18   :  { %62 = vmatpush.msra.mxu0 %v43_v9 }
  0x1a   :  { %63 = vmatpush.msra.mxu0 %v42_v10 }
  0x1c   :  { %64 = vmatpush.msra.mxu0 %v41_v11 }
  0x1e   :  { %65 = vmatpush.msra.mxu0 %v40_v12 }
  0x20   :  { %66 = vmatpush.msra.mxu0 %v39_v13 }
  0x22   :  { %67 = vmatpush.msra.mxu0 %v38_v14 }
  0x24   :  { %68 = vmatpush.msra.mxu0 %v37_v15 }
  0x25   :  { %69 = vmatmul.f32.vlgmr.msra.gmra.mxu0 %v36_v16 }
  0xa2   :  { %v70_v18 = vpop.f32.mrf.mxu0 }
  0xa3   :  { %v83_v19 = vadd.f32 %v94_v17, %v70_v18 }
  0xa5   :  { %84 = vst [vmem:[%s159_s3] sm:$0xff] %v83_v19 }
  0xa6   :  { %89 = vsyncpa [#allocation3], 1 }

</bundles_post_ra>
